<compile_context>
chip_gen: v5e
topology: v5e:2x2
jax: 0.10.0
libtpu: 0.0.40
codegen_flags: <defaults>
</compile_context>

<pallas_src>
import functools
import math

import jax
import jax.numpy as jnp
from jax.experimental import pallas as pl
from jax.experimental.pallas import tpu as pltpu


def _layer_norm(x, g, b, eps=1e-5):
    mu = jnp.mean(x, axis=-1, keepdims=True)
    var = jnp.mean((x - mu) ** 2, axis=-1, keepdims=True)
    return (x - mu) * jax.lax.rsqrt(var + eps) * g + b


# ---------------------------------------------------------------------------
# Fused encoder kernel: all layers, one batch tile per (parallel) grid step.
# ---------------------------------------------------------------------------
def encoder_kernel(x_ref, pad_ref,
                   wq_ref, wk_ref, wv_ref, bq_ref, bk_ref, bv_ref,
                   wo_ref, bo_ref, g1_ref, be1_ref,
                   w1_ref, bf1_ref, w2_ref, bf2_ref, g2_ref, be2_ref,
                   out_ref, *, num_head, head_dim):
    l = pl.program_id(1)

    # Layer 0: seed the resident activation (output block) with the input.
    @pl.when(l == 0)
    def _():
        out_ref[...] = x_ref[...]

    Bt, S, H = out_ref.shape
    BS = Bt * S
    scale = 1.0 / math.sqrt(head_dim)

    x = out_ref[...]                                   # (Bt, S, H) f32, resident
    xf = x.reshape(BS, H)                              # lane dim unchanged
    xf_b = xf.astype(jnp.bfloat16)                     # hoisted MXU-operand cast

    # Additive attention bias built in-kernel (f32): causal + key padding.
    rows = jax.lax.broadcasted_iota(jnp.int32, (S, S), 0)
    cols = jax.lax.broadcasted_iota(jnp.int32, (S, S), 1)
    causal = jnp.where(cols > rows, jnp.float32(-1e30), jnp.float32(0.0))
    bias = causal[None, :, :] + pad_ref[...]           # (Bt, S, S) f32

    # --- multi-head self attention -----------------------------------------
    ao = jnp.zeros((BS, H), jnp.float32)
    for h in range(num_head):                          # head index is a leading axis
        q = jnp.dot(xf_b, wq_ref[0, h],
                    preferred_element_type=jnp.float32) + bq_ref[0, h]   # (BS, Dh)
        k = jnp.dot(xf_b, wk_ref[0, h],
                    preferred_element_type=jnp.float32) + bk_ref[0, h]
        v = jnp.dot(xf_b, wv_ref[0, h],
                    preferred_element_type=jnp.float32) + bv_ref[0, h]
        q3 = q.reshape(Bt, S, head_dim).astype(jnp.bfloat16)
        k3 = k.reshape(Bt, S, head_dim).astype(jnp.bfloat16)
        v3 = v.reshape(Bt, S, head_dim).astype(jnp.bfloat16)

        s = jnp.einsum('bqd,bkd->bqk', q3, k3,
                       preferred_element_type=jnp.float32) * scale + bias  # f32
        m = jnp.max(s, axis=-1, keepdims=True)
        p = jnp.exp(s - m)
        denom = jnp.sum(p, axis=-1, keepdims=True)
        p = p * pl.reciprocal(denom, approx=True)      # EUP reciprocal, f32

        o3 = jnp.einsum('bqk,bkd->bqd', p.astype(jnp.bfloat16), v3,
                        preferred_element_type=jnp.float32)               # (Bt,S,Dh)
        o = o3.reshape(BS, head_dim).astype(jnp.bfloat16)
        # per-head slice of the output projection (head-leading layout, no
        # lane slicing); sum over heads == concat(o_h) @ Wo
        ao = ao + jnp.dot(o, wo_ref[0, h], preferred_element_type=jnp.float32)
    ao = ao + bo_ref[0]

    # --- post-norm residual + FFN (f32 norm math, bf16 MXU operands) -------
    r1 = _layer_norm(xf + ao, g1_ref[0], be1_ref[0])
    ff = jnp.maximum(jnp.dot(r1.astype(jnp.bfloat16), w1_ref[0],
                             preferred_element_type=jnp.float32) + bf1_ref[0], 0.0)
    ff = jnp.dot(ff.astype(jnp.bfloat16), w2_ref[0],
                 preferred_element_type=jnp.float32) + bf2_ref[0]
    r2 = _layer_norm(r1 + ff, g2_ref[0], be2_ref[0])

    out_ref[...] = r2.reshape(Bt, S, H)


def encoder_forward(x, pad_bias, enc, *, block_b=1):
    B, S, H = x.shape
    L, nH, _, Dh = enc["wq"].shape
    assert B % block_b == 0
    grid = (B // block_b, L)

    act_spec = pl.BlockSpec((block_b, S, H), lambda b, l: (b, 0, 0))
    pad_spec = pl.BlockSpec((block_b, 1, S), lambda b, l: (b, 0, 0))

    def w_spec(arr):
        nd = arr.ndim
        return pl.BlockSpec((1,) + arr.shape[1:],
                            lambda b, l, _n=nd: (l,) + (0,) * (_n - 1))

    w_names = ["wq", "wk", "wv", "bq", "bk", "bv", "wo", "bo",
               "g1", "b1", "w1", "bf1", "w2", "bf2", "g2", "b2"]
    w_args = [enc[n] for n in w_names]

    return pl.pallas_call(
        functools.partial(encoder_kernel, num_head=nH, head_dim=Dh),
        out_shape=jax.ShapeDtypeStruct((B, S, H), jnp.float32),
        grid=grid,
        in_specs=[act_spec, pad_spec] + [w_spec(a) for a in w_args],
        out_specs=act_spec,
        compiler_params=pltpu.CompilerParams(
            dimension_semantics=("parallel", "arbitrary")),
    )(x, pad_bias, *w_args)


# ---------------------------------------------------------------------------
# Output head: cond_embed + MLP(2H -> 4H -> 4H -> num_actions), lane-padded.
# ---------------------------------------------------------------------------
def head_kernel(pooled_ref, cond_ref, wc_ref, bc_ref, w1p_ref, w1c_ref, b1_ref,
                w2_ref, b2_ref, w3_ref, b3_ref, out_ref):
    pooled = pooled_ref[...]
    cv = jnp.dot(cond_ref[...].astype(jnp.bfloat16), wc_ref[...],
                 preferred_element_type=jnp.float32) + bc_ref[...]
    # concat((pooled, cond_var)) @ W1 expressed as the equivalent split matmul.
    h1 = jnp.dot(pooled.astype(jnp.bfloat16), w1p_ref[...],
                 preferred_element_type=jnp.float32)
    h1 = h1 + jnp.dot(cv.astype(jnp.bfloat16), w1c_ref[...],
                      preferred_element_type=jnp.float32) + b1_ref[...]
    h1 = jnp.maximum(h1, 0.0)
    h2 = jnp.maximum(jnp.dot(h1.astype(jnp.bfloat16), w2_ref[...],
                             preferred_element_type=jnp.float32) + b2_ref[...], 0.0)
    out_ref[...] = jnp.dot(h2.astype(jnp.bfloat16), w3_ref[...],
                           preferred_element_type=jnp.float32) + b3_ref[...]


def _full_spec(shape):
    nd = len(shape)
    return pl.BlockSpec(shape, lambda i, _nd=nd: (0,) * _nd)


def output_head(pooled, cond, params):
    hp = params["head"]
    B = pooled.shape[0]
    cond_p = jnp.zeros((B, hp["cond_pad"]), jnp.float32).at[:, :hp["cond_dim"]].set(cond)
    args = (pooled, cond_p, hp["wc"], hp["bc"], hp["w1p"], hp["w1c"], hp["b1"],
            hp["w2"], hp["b2"], hp["w3"], hp["b3"])
    na_pad = hp["na_pad"]
    out = pl.pallas_call(
        head_kernel,
        out_shape=jax.ShapeDtypeStruct((B, na_pad), jnp.float32),
        grid=(1,),
        in_specs=[_full_spec(a.shape) for a in args],
        out_specs=_full_spec((B, na_pad)),
        compiler_params=pltpu.CompilerParams(dimension_semantics=("arbitrary",)),
    )(*args)
    return out[:, :hp["num_actions"]]


# ---------------------------------------------------------------------------
# Full forward (use_cond=True, return_all=False, eval mode).
# ---------------------------------------------------------------------------
def cond_gfn_transformer_forward(params, tokens, cond, key_pad_mask, lens, *, block_b=1):
    """tokens: (S, B) int32 (seq-first, like PyTorch); cond: (B, cond_dim);
    key_pad_mask: (B, S) bool (True = padded); lens: (B,) int32."""
    S, B = tokens.shape
    x = params["embedding"][tokens]                 # (S, B, H) embedding lookup (glue)
    x = x + params["pe"][:S]                        # positional encoding (dropout = id)
    x = jnp.transpose(x, (1, 0, 2))                 # -> (B, S, H) batch-first
    pad_bias = jnp.where(key_pad_mask, -1e30, 0.0).astype(jnp.float32)[:, None, :]  # (B,1,S)
    x = encoder_forward(x, pad_bias, params["enc"], block_b=block_b)
    pooled = x[jnp.arange(B), lens - 1]             # == x_seqfirst[lens-1, arange(B)]
    return output_head(pooled, cond, params)


def init_params(key, *, num_hid, cond_dim, max_len, vocab_size, num_actions,
                num_layers, num_head):
    H = num_hid
    Dh = H // num_head
    F = num_hid                                     # dim_feedforward = num_hid
    ks = iter(jax.random.split(key, 128))

    def nrm(shape, scale=0.1):
        return (scale * jax.random.normal(next(ks), shape)).astype(jnp.float32)

    def bf16(x):
        return x.astype(jnp.bfloat16)

    params = {"embedding": nrm((vocab_size, H), 1.0)}
    # sinusoidal positional encoding, shape (max_len + 2, 1, H)
    pos = jnp.arange(max_len + 2, dtype=jnp.float32)[:, None]
    div = jnp.exp(jnp.arange(0, H, 2, dtype=jnp.float32) * (-math.log(10000.0) / H))
    pe = jnp.zeros((max_len + 2, H), jnp.float32)
    pe = pe.at[:, 0::2].set(jnp.sin(pos * div))
    pe = pe.at[:, 1::2].set(jnp.cos(pos * div))
    params["pe"] = pe[:, None, :]

    L, nH = num_layers, num_head
    params["enc"] = dict(
        wq=bf16(nrm((L, nH, H, Dh))), wk=bf16(nrm((L, nH, H, Dh))),
        wv=bf16(nrm((L, nH, H, Dh))),
        bq=nrm((L, nH, 1, Dh)), bk=nrm((L, nH, 1, Dh)), bv=nrm((L, nH, 1, Dh)),
        wo=bf16(nrm((L, nH, Dh, H))), bo=nrm((L, 1, H)),
        g1=jnp.ones((L, 1, H), jnp.float32), b1=jnp.zeros((L, 1, H), jnp.float32),
        w1=bf16(nrm((L, H, F))), bf1=nrm((L, 1, F)),
        w2=bf16(nrm((L, F, H))), bf2=nrm((L, 1, H)),
        g2=jnp.ones((L, 1, H), jnp.float32), b2=jnp.zeros((L, 1, H), jnp.float32),
    )

    # use_cond head: cond_embed(cond_dim -> H) + MLP(2H -> 4H -> 4H -> num_actions)
    cd_pad = 8                                       # sublane-friendly cond pad (zero rows)
    na_pad = ((num_actions + 127) // 128) * 128      # lane-dense output slab
    wc = jnp.zeros((cd_pad, H), jnp.float32).at[:cond_dim].set(nrm((cond_dim, H)))
    w3 = jnp.zeros((4 * H, na_pad), jnp.float32).at[:, :num_actions].set(
        nrm((4 * H, num_actions)))
    b3 = jnp.zeros((1, na_pad), jnp.float32).at[:, :num_actions].set(
        nrm((1, num_actions)))
    params["head"] = dict(
        num_actions=num_actions, cond_dim=cond_dim, cond_pad=cd_pad, na_pad=na_pad,
        wc=bf16(wc), bc=nrm((1, H)),
        w1p=bf16(nrm((H, 4 * H))), w1c=bf16(nrm((H, 4 * H))), b1=nrm((1, 4 * H)),
        w2=bf16(nrm((4 * H, 4 * H))), b2=nrm((1, 4 * H)),
        w3=bf16(w3), b3=b3,
    )
    # TODO(synk): Z_mod (Linear(cond_dim, num_hid)) is not used in forward(); omitted.
    return params


if __name__ == "__main__":
    num_hid, cond_dim, max_len, vocab_size = 32, 3, 8, 8
    num_actions, num_layers, num_head = 6, 2, 2
    B, S = 2, 8

    key = jax.random.PRNGKey(0)
    kp, kt, kc = jax.random.split(key, 3)
    params = init_params(kp, num_hid=num_hid, cond_dim=cond_dim, max_len=max_len,
                         vocab_size=vocab_size, num_actions=num_actions,
                         num_layers=num_layers, num_head=num_head)

    tokens = jax.random.randint(kt, (S, B), 0, vocab_size, dtype=jnp.int32)   # seq-first
    cond = jax.random.normal(kc, (B, cond_dim), dtype=jnp.float32)
    lens = jnp.array([S, S - 2], dtype=jnp.int32)
    key_pad_mask = jnp.arange(S)[None, :] >= lens[:, None]                    # (B, S)

    y = cond_gfn_transformer_forward(params, tokens, cond, key_pad_mask, lens,
                                     block_b=1)
    y = jax.block_until_ready(y)
    assert y.shape == (B, num_actions)
    assert bool(jnp.all(jnp.isfinite(y)))
    print("KERNEL_OK")
</pallas_src>

<mosaic_0001>
module attributes {stable_mosaic.version = 11 : i64} {
  func.func @encoder_kernel(%arg0: i32, %arg1: i32, %arg2: memref<1x8x32xf32, #tpu.memory_space<vmem>>, %arg3: memref<1x1x8xf32, #tpu.memory_space<vmem>>, %arg4: memref<1x2x32x16xbf16, #tpu.memory_space<vmem>>, %arg5: memref<1x2x32x16xbf16, #tpu.memory_space<vmem>>, %arg6: memref<1x2x32x16xbf16, #tpu.memory_space<vmem>>, %arg7: memref<1x2x1x16xf32, #tpu.memory_space<vmem>>, %arg8: memref<1x2x1x16xf32, #tpu.memory_space<vmem>>, %arg9: memref<1x2x1x16xf32, #tpu.memory_space<vmem>>, %arg10: memref<1x2x16x32xbf16, #tpu.memory_space<vmem>>, %arg11: memref<1x1x32xf32, #tpu.memory_space<vmem>>, %arg12: memref<1x1x32xf32, #tpu.memory_space<vmem>>, %arg13: memref<1x1x32xf32, #tpu.memory_space<vmem>>, %arg14: memref<1x32x32xbf16, #tpu.memory_space<vmem>>, %arg15: memref<1x1x32xf32, #tpu.memory_space<vmem>>, %arg16: memref<1x32x32xbf16, #tpu.memory_space<vmem>>, %arg17: memref<1x1x32xf32, #tpu.memory_space<vmem>>, %arg18: memref<1x1x32xf32, #tpu.memory_space<vmem>>, %arg19: memref<1x1x32xf32, #tpu.memory_space<vmem>>, %arg20: memref<1x8x32xf32, #tpu.memory_space<vmem>>) attributes {dimension_semantics = [#tpu.dimension_semantics<parallel>, #tpu.dimension_semantics<arbitrary>], iteration_bounds = array<i64: 2, 2>, scalar_prefetch = 0 : i64, scratch_operands = 0 : i64, tpu.core_type = #tpu.core_type<tc>, window_params = [{transform_indices = @transform_0, window_bounds = array<i64: 1, 8, 32>}, {transform_indices = @transform_1, window_bounds = array<i64: 1, 1, 8>}, {transform_indices = @transform_2, window_bounds = array<i64: 1, 2, 32, 16>}, {transform_indices = @transform_3, window_bounds = array<i64: 1, 2, 32, 16>}, {transform_indices = @transform_4, window_bounds = array<i64: 1, 2, 32, 16>}, {transform_indices = @transform_5, window_bounds = array<i64: 1, 2, 1, 16>}, {transform_indices = @transform_6, window_bounds = array<i64: 1, 2, 1, 16>}, {transform_indices = @transform_7, window_bounds = array<i64: 1, 2, 1, 16>}, {transform_indices = @transform_8, window_bounds = array<i64: 1, 2, 16, 32>}, {transform_indices = @transform_9, window_bounds = array<i64: 1, 1, 32>}, {transform_indices = @transform_10, window_bounds = array<i64: 1, 1, 32>}, {transform_indices = @transform_11, window_bounds = array<i64: 1, 1, 32>}, {transform_indices = @transform_12, window_bounds = array<i64: 1, 32, 32>}, {transform_indices = @transform_13, window_bounds = array<i64: 1, 1, 32>}, {transform_indices = @transform_14, window_bounds = array<i64: 1, 32, 32>}, {transform_indices = @transform_15, window_bounds = array<i64: 1, 1, 32>}, {transform_indices = @transform_16, window_bounds = array<i64: 1, 1, 32>}, {transform_indices = @transform_17, window_bounds = array<i64: 1, 1, 32>}, {transform_indices = @transform_18, window_bounds = array<i64: 1, 8, 32>}]} {
    %c0_i32 = arith.constant 0 : i32
    %0 = arith.cmpi eq, %arg1, %c0_i32 : i32
    %1 = arith.extui %0 : i1 to i32
    %c0_i32_0 = arith.constant 0 : i32
    %2 = arith.cmpi ne, %1, %c0_i32_0 : i32
    scf.if %2 {
      %c0_124 = arith.constant 0 : index
      %c0_125 = arith.constant 0 : index
      %c0_126 = arith.constant 0 : index
      %193 = vector.load %arg2[%c0_124, %c0_125, %c0_126] : memref<1x8x32xf32, #tpu.memory_space<vmem>>, vector<1x8x32xf32>
      %c0_127 = arith.constant 0 : index
      %c0_128 = arith.constant 0 : index
      %c0_129 = arith.constant 0 : index
      %194 = vector.load %arg20[%c0_127, %c0_128, %c0_129] : memref<1x8x32xf32, #tpu.memory_space<vmem>>, vector<1x8x32xf32>
      tpu.vector_store %arg20[%c0_127, %c0_128, %c0_129], %193 {strides = array<i32>} : memref<1x8x32xf32, #tpu.memory_space<vmem>>, vector<1x8x32xf32>,
    } else {
    }
    %c0 = arith.constant 0 : index
    %c0_1 = arith.constant 0 : index
    %c0_2 = arith.constant 0 : index
    %3 = vector.load %arg20[%c0, %c0_1, %c0_2] : memref<1x8x32xf32, #tpu.memory_space<vmem>>, vector<1x8x32xf32>
    %4 = vector.shape_cast %3 : vector<1x8x32xf32> to vector<8x32xf32>
    %5 = arith.truncf %4 : vector<8x32xf32> to vector<8x32xbf16>
    %6 = tpu.iota {dimensions = array<i32: 0>} : vector<8x8xi32>
    %7 = tpu.iota {dimensions = array<i32: 1>} : vector<8x8xi32>
    %8 = arith.cmpi sgt, %7, %6 : vector<8x8xi32>
    %cst = arith.constant -1.000000e+30 : f32
    %cst_3 = arith.constant 0.000000e+00 : f32
    %9 = vector.broadcast %cst : f32 to vector<8x8xf32>
    %10 = vector.broadcast %cst_3 : f32 to vector<8x8xf32>
    %11 = arith.select %8, %9, %10 : vector<8x8xi1>, vector<8x8xf32>
    %12 = vector.shape_cast %11 : vector<8x8xf32> to vector<1x8x8xf32>
    %c0_4 = arith.constant 0 : index
    %c0_5 = arith.constant 0 : index
    %c0_6 = arith.constant 0 : index
    %13 = vector.load %arg3[%c0_4, %c0_5, %c0_6] : memref<1x1x8xf32, #tpu.memory_space<vmem>>, vector<1x1x8xf32>
    %14 = vector.broadcast %13 : vector<1x1x8xf32> to vector<1x8x8xf32>
    %15 = arith.addf %12, %14 : vector<1x8x8xf32>
    %cst_7 = arith.constant 0.000000e+00 : f32
    %16 = vector.broadcast %cst_7 : f32 to vector<8x32xf32>
    %c0_8 = arith.constant 0 : index
    %c0_9 = arith.constant 0 : index
    %c0_10 = arith.constant 0 : index
    %c0_11 = arith.constant 0 : index
    %17 = vector.load %arg4[%c0_8, %c0_9, %c0_10, %c0_11] : memref<1x2x32x16xbf16, #tpu.memory_space<vmem>>, vector<1x1x32x16xbf16>
    %18 = vector.shape_cast %17 : vector<1x1x32x16xbf16> to vector<32x16xbf16>
    %cst_12 = arith.constant dense<0.000000e+00> : vector<8x16xf32>
    %19 = tpu.matmul %5, %18, %cst_12 {dimension_numbers = #tpu.dot_dimension_numbers<[1], [0], [0], [1], [0, 0, 1, 1], [], []>} : vector<8x32xbf16>, vector<32x16xbf16>, vector<8x16xf32> -> vector<8x16xf32>
    %c0_13 = arith.constant 0 : index
    %c0_14 = arith.constant 0 : index
    %c0_15 = arith.constant 0 : index
    %c0_16 = arith.constant 0 : index
    %20 = vector.load %arg7[%c0_13, %c0_14, %c0_15, %c0_16] : memref<1x2x1x16xf32, #tpu.memory_space<vmem>>, vector<1x1x1x16xf32>
    %21 = vector.shape_cast %20 : vector<1x1x1x16xf32> to vector<1x16xf32>
    %22 = vector.broadcast %21 : vector<1x16xf32> to vector<8x16xf32>
    %23 = arith.addf %19, %22 : vector<8x16xf32>
    %c0_17 = arith.constant 0 : index
    %c0_18 = arith.constant 0 : index
    %c0_19 = arith.constant 0 : index
    %c0_20 = arith.constant 0 : index
    %24 = vector.load %arg5[%c0_17, %c0_18, %c0_19, %c0_20] : memref<1x2x32x16xbf16, #tpu.memory_space<vmem>>, vector<1x1x32x16xbf16>
    %25 = vector.shape_cast %24 : vector<1x1x32x16xbf16> to vector<32x16xbf16>
    %cst_21 = arith.constant dense<0.000000e+00> : vector<8x16xf32>
    %26 = tpu.matmul %5, %25, %cst_21 {dimension_numbers = #tpu.dot_dimension_numbers<[1], [0], [0], [1], [0, 0, 1, 1], [], []>} : vector<8x32xbf16>, vector<32x16xbf16>, vector<8x16xf32> -> vector<8x16xf32>
    %c0_22 = arith.constant 0 : index
    %c0_23 = arith.constant 0 : index
    %c0_24 = arith.constant 0 : index
    %c0_25 = arith.constant 0 : index
    %27 = vector.load %arg8[%c0_22, %c0_23, %c0_24, %c0_25] : memref<1x2x1x16xf32, #tpu.memory_space<vmem>>, vector<1x1x1x16xf32>
    %28 = vector.shape_cast %27 : vector<1x1x1x16xf32> to vector<1x16xf32>
    %29 = vector.broadcast %28 : vector<1x16xf32> to vector<8x16xf32>
    %30 = arith.addf %26, %29 : vector<8x16xf32>
    %c0_26 = arith.constant 0 : index
    %c0_27 = arith.constant 0 : index
    %c0_28 = arith.constant 0 : index
    %c0_29 = arith.constant 0 : index
    %31 = vector.load %arg6[%c0_26, %c0_27, %c0_28, %c0_29] : memref<1x2x32x16xbf16, #tpu.memory_space<vmem>>, vector<1x1x32x16xbf16>
    %32 = vector.shape_cast %31 : vector<1x1x32x16xbf16> to vector<32x16xbf16>
    %cst_30 = arith.constant dense<0.000000e+00> : vector<8x16xf32>
    %33 = tpu.matmul %5, %32, %cst_30 {dimension_numbers = #tpu.dot_dimension_numbers<[1], [0], [0], [1], [0, 0, 1, 1], [], []>} : vector<8x32xbf16>, vector<32x16xbf16>, vector<8x16xf32> -> vector<8x16xf32>
    %c0_31 = arith.constant 0 : index
    %c0_32 = arith.constant 0 : index
    %c0_33 = arith.constant 0 : index
    %c0_34 = arith.constant 0 : index
    %34 = vector.load %arg9[%c0_31, %c0_32, %c0_33, %c0_34] : memref<1x2x1x16xf32, #tpu.memory_space<vmem>>, vector<1x1x1x16xf32>
    %35 = vector.shape_cast %34 : vector<1x1x1x16xf32> to vector<1x16xf32>
    %36 = vector.broadcast %35 : vector<1x16xf32> to vector<8x16xf32>
    %37 = arith.addf %33, %36 : vector<8x16xf32>
    %38 = vector.shape_cast %23 : vector<8x16xf32> to vector<1x8x16xf32>
    %39 = arith.truncf %38 : vector<1x8x16xf32> to vector<1x8x16xbf16>
    %40 = vector.shape_cast %30 : vector<8x16xf32> to vector<1x8x16xf32>
    %41 = arith.truncf %40 : vector<1x8x16xf32> to vector<1x8x16xbf16>
    %42 = vector.shape_cast %37 : vector<8x16xf32> to vector<1x8x16xf32>
    %43 = arith.truncf %42 : vector<1x8x16xf32> to vector<1x8x16xbf16>
    "tpu.trace_start"() <{level = 10 : i32, message = "bqd,bkd->bqk"}> : () -> ()
    %cst_35 = arith.constant dense<0.000000e+00> : vector<1x8x8xf32>
    %44 = tpu.matmul %39, %41, %cst_35 {dimension_numbers = #tpu.dot_dimension_numbers<[2], [2], [1], [1], [0, 0, 0, 1, 1, 1], [0], [0]>} : vector<1x8x16xbf16>, vector<1x8x16xbf16>, vector<1x8x8xf32> -> vector<1x8x8xf32>
    "tpu.trace_stop"() : () -> ()
    %cst_36 = arith.constant 2.500000e-01 : f32
    %45 = vector.broadcast %cst_36 : f32 to vector<1x8x8xf32>
    %46 = arith.mulf %44, %45 : vector<1x8x8xf32>
    %47 = arith.addf %46, %15 : vector<1x8x8xf32>
    %cst_37 = arith.constant dense<0xFF800000> : vector<1x8xf32>
    %48 = vector.multi_reduction <maximumf>, %47, %cst_37 [2] : vector<1x8x8xf32> to vector<1x8xf32>
    %49 = vector.shape_cast %48 : vector<1x8xf32> to vector<1x8x1xf32>
    %50 = vector.broadcast %49 : vector<1x8x1xf32> to vector<1x8x8xf32>
    %51 = arith.subf %47, %50 : vector<1x8x8xf32>
    %52 = math.exp %51 : vector<1x8x8xf32>
    %cst_38 = arith.constant dense<0.000000e+00> : vector<1x8xf32>
    %53 = vector.multi_reduction <add>, %52, %cst_38 [2] : vector<1x8x8xf32> to vector<1x8xf32>
    %54 = vector.shape_cast %53 : vector<1x8xf32> to vector<1x8x1xf32>
    %55 = tpu.reciprocal %54 {approx = true} : vector<1x8x1xf32> -> vector<1x8x1xf32>
    %56 = vector.broadcast %55 : vector<1x8x1xf32> to vector<1x8x8xf32>
    %57 = arith.mulf %52, %56 : vector<1x8x8xf32>
    %58 = arith.truncf %57 : vector<1x8x8xf32> to vector<1x8x8xbf16>
    "tpu.trace_start"() <{level = 10 : i32, message = "bqk,bkd->bqd"}> : () -> ()
    %cst_39 = arith.constant dense<0.000000e+00> : vector<1x8x16xf32>
    %59 = tpu.matmul %58, %43, %cst_39 {dimension_numbers = #tpu.dot_dimension_numbers<[2], [1], [1], [2], [0, 0, 0, 1, 1, 2], [0], [0]>} : vector<1x8x8xbf16>, vector<1x8x16xbf16>, vector<1x8x16xf32> -> vector<1x8x16xf32>
    "tpu.trace_stop"() : () -> ()
    %60 = vector.shape_cast %59 : vector<1x8x16xf32> to vector<8x16xf32>
    %61 = arith.truncf %60 : vector<8x16xf32> to vector<8x16xbf16>
    %c0_40 = arith.constant 0 : index
    %c0_41 = arith.constant 0 : index
    %c0_42 = arith.constant 0 : index
    %c0_43 = arith.constant 0 : index
    %62 = vector.load %arg10[%c0_40, %c0_41, %c0_42, %c0_43] : memref<1x2x16x32xbf16, #tpu.memory_space<vmem>>, vector<1x1x16x32xbf16>
    %63 = vector.shape_cast %62 : vector<1x1x16x32xbf16> to vector<16x32xbf16>
    %cst_44 = arith.constant dense<0.000000e+00> : vector<8x32xf32>
    %64 = tpu.matmul %61, %63, %cst_44 {dimension_numbers = #tpu.dot_dimension_numbers<[1], [0], [0], [1], [0, 0, 1, 1], [], []>} : vector<8x16xbf16>, vector<16x32xbf16>, vector<8x32xf32> -> vector<8x32xf32>
    %65 = arith.addf %16, %64 : vector<8x32xf32>
    %c0_45 = arith.constant 0 : index
    %c1 = arith.constant 1 : index
    %c0_46 = arith.constant 0 : index
    %c0_47 = arith.constant 0 : index
    %66 = vector.load %arg4[%c0_45, %c1, %c0_46, %c0_47] : memref<1x2x32x16xbf16, #tpu.memory_space<vmem>>, vector<1x1x32x16xbf16>
    %67 = vector.shape_cast %66 : vector<1x1x32x16xbf16> to vector<32x16xbf16>
    %cst_48 = arith.constant dense<0.000000e+00> : vector<8x16xf32>
    %68 = tpu.matmul %5, %67, %cst_48 {dimension_numbers = #tpu.dot_dimension_numbers<[1], [0], [0], [1], [0, 0, 1, 1], [], []>} : vector<8x32xbf16>, vector<32x16xbf16>, vector<8x16xf32> -> vector<8x16xf32>
    %c0_49 = arith.constant 0 : index
    %c1_50 = arith.constant 1 : index
    %c0_51 = arith.constant 0 : index
    %c0_52 = arith.constant 0 : index
    %69 = vector.load %arg7[%c0_49, %c1_50, %c0_51, %c0_52] : memref<1x2x1x16xf32, #tpu.memory_space<vmem>>, vector<1x1x1x16xf32>
    %70 = vector.shape_cast %69 : vector<1x1x1x16xf32> to vector<1x16xf32>
    %71 = vector.broadcast %70 : vector<1x16xf32> to vector<8x16xf32>
    %72 = arith.addf %68, %71 : vector<8x16xf32>
    %c0_53 = arith.constant 0 : index
    %c1_54 = arith.constant 1 : index
    %c0_55 = arith.constant 0 : index
    %c0_56 = arith.constant 0 : index
    %73 = vector.load %arg5[%c0_53, %c1_54, %c0_55, %c0_56] : memref<1x2x32x16xbf16, #tpu.memory_space<vmem>>, vector<1x1x32x16xbf16>
    %74 = vector.shape_cast %73 : vector<1x1x32x16xbf16> to vector<32x16xbf16>
    %cst_57 = arith.constant dense<0.000000e+00> : vector<8x16xf32>
    %75 = tpu.matmul %5, %74, %cst_57 {dimension_numbers = #tpu.dot_dimension_numbers<[1], [0], [0], [1], [0, 0, 1, 1], [], []>} : vector<8x32xbf16>, vector<32x16xbf16>, vector<8x16xf32> -> vector<8x16xf32>
    %c0_58 = arith.constant 0 : index
    %c1_59 = arith.constant 1 : index
    %c0_60 = arith.constant 0 : index
    %c0_61 = arith.constant 0 : index
    %76 = vector.load %arg8[%c0_58, %c1_59, %c0_60, %c0_61] : memref<1x2x1x16xf32, #tpu.memory_space<vmem>>, vector<1x1x1x16xf32>
    %77 = vector.shape_cast %76 : vector<1x1x1x16xf32> to vector<1x16xf32>
    %78 = vector.broadcast %77 : vector<1x16xf32> to vector<8x16xf32>
    %79 = arith.addf %75, %78 : vector<8x16xf32>
    %c0_62 = arith.constant 0 : index
    %c1_63 = arith.constant 1 : index
    %c0_64 = arith.constant 0 : index
    %c0_65 = arith.constant 0 : index
    %80 = vector.load %arg6[%c0_62, %c1_63, %c0_64, %c0_65] : memref<1x2x32x16xbf16, #tpu.memory_space<vmem>>, vector<1x1x32x16xbf16>
    %81 = vector.shape_cast %80 : vector<1x1x32x16xbf16> to vector<32x16xbf16>
    %cst_66 = arith.constant dense<0.000000e+00> : vector<8x16xf32>
    %82 = tpu.matmul %5, %81, %cst_66 {dimension_numbers = #tpu.dot_dimension_numbers<[1], [0], [0], [1], [0, 0, 1, 1], [], []>} : vector<8x32xbf16>, vector<32x16xbf16>, vector<8x16xf32> -> vector<8x16xf32>
    %c0_67 = arith.constant 0 : index
    %c1_68 = arith.constant 1 : index
    %c0_69 = arith.constant 0 : index
    %c0_70 = arith.constant 0 : index
    %83 = vector.load %arg9[%c0_67, %c1_68, %c0_69, %c0_70] : memref<1x2x1x16xf32, #tpu.memory_space<vmem>>, vector<1x1x1x16xf32>
    %84 = vector.shape_cast %83 : vector<1x1x1x16xf32> to vector<1x16xf32>
    %85 = vector.broadcast %84 : vector<1x16xf32> to vector<8x16xf32>
    %86 = arith.addf %82, %85 : vector<8x16xf32>
    %87 = vector.shape_cast %72 : vector<8x16xf32> to vector<1x8x16xf32>
    %88 = arith.truncf %87 : vector<1x8x16xf32> to vector<1x8x16xbf16>
    %89 = vector.shape_cast %79 : vector<8x16xf32> to vector<1x8x16xf32>
    %90 = arith.truncf %89 : vector<1x8x16xf32> to vector<1x8x16xbf16>
    %91 = vector.shape_cast %86 : vector<8x16xf32> to vector<1x8x16xf32>
    %92 = arith.truncf %91 : vector<1x8x16xf32> to vector<1x8x16xbf16>
    "tpu.trace_start"() <{level = 10 : i32, message = "bqd,bkd->bqk"}> : () -> ()
    %cst_71 = arith.constant dense<0.000000e+00> : vector<1x8x8xf32>
    %93 = tpu.matmul %88, %90, %cst_71 {dimension_numbers = #tpu.dot_dimension_numbers<[2], [2], [1], [1], [0, 0, 0, 1, 1, 1], [0], [0]>} : vector<1x8x16xbf16>, vector<1x8x16xbf16>, vector<1x8x8xf32> -> vector<1x8x8xf32>
    "tpu.trace_stop"() : () -> ()
    %cst_72 = arith.constant 2.500000e-01 : f32
    %94 = vector.broadcast %cst_72 : f32 to vector<1x8x8xf32>
    %95 = arith.mulf %93, %94 : vector<1x8x8xf32>
    %96 = arith.addf %95, %15 : vector<1x8x8xf32>
    %cst_73 = arith.constant dense<0xFF800000> : vector<1x8xf32>
    %97 = vector.multi_reduction <maximumf>, %96, %cst_73 [2] : vector<1x8x8xf32> to vector<1x8xf32>
    %98 = vector.shape_cast %97 : vector<1x8xf32> to vector<1x8x1xf32>
    %99 = vector.broadcast %98 : vector<1x8x1xf32> to vector<1x8x8xf32>
    %100 = arith.subf %96, %99 : vector<1x8x8xf32>
    %101 = math.exp %100 : vector<1x8x8xf32>
    %cst_74 = arith.constant dense<0.000000e+00> : vector<1x8xf32>
    %102 = vector.multi_reduction <add>, %101, %cst_74 [2] : vector<1x8x8xf32> to vector<1x8xf32>
    %103 = vector.shape_cast %102 : vector<1x8xf32> to vector<1x8x1xf32>
    %104 = tpu.reciprocal %103 {approx = true} : vector<1x8x1xf32> -> vector<1x8x1xf32>
    %105 = vector.broadcast %104 : vector<1x8x1xf32> to vector<1x8x8xf32>
    %106 = arith.mulf %101, %105 : vector<1x8x8xf32>
    %107 = arith.truncf %106 : vector<1x8x8xf32> to vector<1x8x8xbf16>
    "tpu.trace_start"() <{level = 10 : i32, message = "bqk,bkd->bqd"}> : () -> ()
    %cst_75 = arith.constant dense<0.000000e+00> : vector<1x8x16xf32>
    %108 = tpu.matmul %107, %92, %cst_75 {dimension_numbers = #tpu.dot_dimension_numbers<[2], [1], [1], [2], [0, 0, 0, 1, 1, 2], [0], [0]>} : vector<1x8x8xbf16>, vector<1x8x16xbf16>, vector<1x8x16xf32> -> vector<1x8x16xf32>
    "tpu.trace_stop"() : () -> ()
    %109 = vector.shape_cast %108 : vector<1x8x16xf32> to vector<8x16xf32>
    %110 = arith.truncf %109 : vector<8x16xf32> to vector<8x16xbf16>
    %c0_76 = arith.constant 0 : index
    %c1_77 = arith.constant 1 : index
    %c0_78 = arith.constant 0 : index
    %c0_79 = arith.constant 0 : index
    %111 = vector.load %arg10[%c0_76, %c1_77, %c0_78, %c0_79] : memref<1x2x16x32xbf16, #tpu.memory_space<vmem>>, vector<1x1x16x32xbf16>
    %112 = vector.shape_cast %111 : vector<1x1x16x32xbf16> to vector<16x32xbf16>
    %cst_80 = arith.constant dense<0.000000e+00> : vector<8x32xf32>
    %113 = tpu.matmul %110, %112, %cst_80 {dimension_numbers = #tpu.dot_dimension_numbers<[1], [0], [0], [1], [0, 0, 1, 1], [], []>} : vector<8x16xbf16>, vector<16x32xbf16>, vector<8x32xf32> -> vector<8x32xf32>
    %114 = arith.addf %65, %113 : vector<8x32xf32>
    %c0_81 = arith.constant 0 : index
    %c0_82 = arith.constant 0 : index
    %c0_83 = arith.constant 0 : index
    %115 = vector.load %arg11[%c0_81, %c0_82, %c0_83] : memref<1x1x32xf32, #tpu.memory_space<vmem>>, vector<1x1x32xf32>
    %116 = vector.shape_cast %115 : vector<1x1x32xf32> to vector<1x32xf32>
    %117 = vector.broadcast %116 : vector<1x32xf32> to vector<8x32xf32>
    %118 = arith.addf %114, %117 : vector<8x32xf32>
    %119 = arith.addf %4, %118 : vector<8x32xf32>
    %c0_84 = arith.constant 0 : index
    %c0_85 = arith.constant 0 : index
    %c0_86 = arith.constant 0 : index
    %120 = vector.load %arg12[%c0_84, %c0_85, %c0_86] : memref<1x1x32xf32, #tpu.memory_space<vmem>>, vector<1x1x32xf32>
    %121 = vector.shape_cast %120 : vector<1x1x32xf32> to vector<1x32xf32>
    %c0_87 = arith.constant 0 : index
    %c0_88 = arith.constant 0 : index
    %c0_89 = arith.constant 0 : index
    %122 = vector.load %arg13[%c0_87, %c0_88, %c0_89] : memref<1x1x32xf32, #tpu.memory_space<vmem>>, vector<1x1x32xf32>
    %123 = vector.shape_cast %122 : vector<1x1x32xf32> to vector<1x32xf32>
    %cst_90 = arith.constant dense<0.000000e+00> : vector<8xf32>
    %124 = vector.multi_reduction <add>, %119, %cst_90 [1] : vector<8x32xf32> to vector<8xf32>
    %125 = vector.shape_cast %124 : vector<8xf32> to vector<8x1xf32>
    %cst_91 = arith.constant 3.200000e+01 : f32
    %126 = vector.broadcast %cst_91 : f32 to vector<8x1xf32>
    %127 = arith.divf %125, %126 : vector<8x1xf32>
    %128 = vector.broadcast %127 : vector<8x1xf32> to vector<8x32xf32>
    %129 = arith.subf %119, %128 : vector<8x32xf32>
    %130 = arith.mulf %129, %129 : vector<8x32xf32>
    %cst_92 = arith.constant dense<0.000000e+00> : vector<8xf32>
    %131 = vector.multi_reduction <add>, %130, %cst_92 [1] : vector<8x32xf32> to vector<8xf32>
    %132 = vector.shape_cast %131 : vector<8xf32> to vector<8x1xf32>
    %cst_93 = arith.constant 3.200000e+01 : f32
    %133 = vector.broadcast %cst_93 : f32 to vector<8x1xf32>
    %134 = arith.divf %132, %133 : vector<8x1xf32>
    %135 = vector.broadcast %127 : vector<8x1xf32> to vector<8x32xf32>
    %136 = arith.subf %119, %135 : vector<8x32xf32>
    %cst_94 = arith.constant 9.99999974E-6 : f32
    %137 = vector.broadcast %cst_94 : f32 to vector<8x1xf32>
    %138 = arith.addf %134, %137 : vector<8x1xf32>
    %139 = math.rsqrt %138 : vector<8x1xf32>
    %140 = vector.broadcast %139 : vector<8x1xf32> to vector<8x32xf32>
    %141 = arith.mulf %136, %140 : vector<8x32xf32>
    %142 = vector.broadcast %121 : vector<1x32xf32> to vector<8x32xf32>
    %143 = arith.mulf %141, %142 : vector<8x32xf32>
    %144 = vector.broadcast %123 : vector<1x32xf32> to vector<8x32xf32>
    %145 = arith.addf %143, %144 : vector<8x32xf32>
    %146 = arith.truncf %145 : vector<8x32xf32> to vector<8x32xbf16>
    %c0_95 = arith.constant 0 : index
    %c0_96 = arith.constant 0 : index
    %c0_97 = arith.constant 0 : index
    %147 = vector.load %arg14[%c0_95, %c0_96, %c0_97] : memref<1x32x32xbf16, #tpu.memory_space<vmem>>, vector<1x32x32xbf16>
    %148 = vector.shape_cast %147 : vector<1x32x32xbf16> to vector<32x32xbf16>
    %cst_98 = arith.constant dense<0.000000e+00> : vector<8x32xf32>
    %149 = tpu.matmul %146, %148, %cst_98 {dimension_numbers = #tpu.dot_dimension_numbers<[1], [0], [0], [1], [0, 0, 1, 1], [], []>} : vector<8x32xbf16>, vector<32x32xbf16>, vector<8x32xf32> -> vector<8x32xf32>
    %c0_99 = arith.constant 0 : index
    %c0_100 = arith.constant 0 : index
    %c0_101 = arith.constant 0 : index
    %150 = vector.load %arg15[%c0_99, %c0_100, %c0_101] : memref<1x1x32xf32, #tpu.memory_space<vmem>>, vector<1x1x32xf32>
    %151 = vector.shape_cast %150 : vector<1x1x32xf32> to vector<1x32xf32>
    %152 = vector.broadcast %151 : vector<1x32xf32> to vector<8x32xf32>
    %153 = arith.addf %149, %152 : vector<8x32xf32>
    %cst_102 = arith.constant 0.000000e+00 : f32
    %154 = vector.broadcast %cst_102 : f32 to vector<8x32xf32>
    %155 = arith.maximumf %153, %154 : vector<8x32xf32>
    %156 = arith.truncf %155 : vector<8x32xf32> to vector<8x32xbf16>
    %c0_103 = arith.constant 0 : index
    %c0_104 = arith.constant 0 : index
    %c0_105 = arith.constant 0 : index
    %157 = vector.load %arg16[%c0_103, %c0_104, %c0_105] : memref<1x32x32xbf16, #tpu.memory_space<vmem>>, vector<1x32x32xbf16>
    %158 = vector.shape_cast %157 : vector<1x32x32xbf16> to vector<32x32xbf16>
    %cst_106 = arith.constant dense<0.000000e+00> : vector<8x32xf32>
    %159 = tpu.matmul %156, %158, %cst_106 {dimension_numbers = #tpu.dot_dimension_numbers<[1], [0], [0], [1], [0, 0, 1, 1], [], []>} : vector<8x32xbf16>, vector<32x32xbf16>, vector<8x32xf32> -> vector<8x32xf32>
    %c0_107 = arith.constant 0 : index
    %c0_108 = arith.constant 0 : index
    %c0_109 = arith.constant 0 : index
    %160 = vector.load %arg17[%c0_107, %c0_108, %c0_109] : memref<1x1x32xf32, #tpu.memory_space<vmem>>, vector<1x1x32xf32>
    %161 = vector.shape_cast %160 : vector<1x1x32xf32> to vector<1x32xf32>
    %162 = vector.broadcast %161 : vector<1x32xf32> to vector<8x32xf32>
    %163 = arith.addf %159, %162 : vector<8x32xf32>
    %164 = arith.addf %145, %163 : vector<8x32xf32>
    %c0_110 = arith.constant 0 : index
    %c0_111 = arith.constant 0 : index
    %c0_112 = arith.constant 0 : index
    %165 = vector.load %arg18[%c0_110, %c0_111, %c0_112] : memref<1x1x32xf32, #tpu.memory_space<vmem>>, vector<1x1x32xf32>
    %166 = vector.shape_cast %165 : vector<1x1x32xf32> to vector<1x32xf32>
    %c0_113 = arith.constant 0 : index
    %c0_114 = arith.constant 0 : index
    %c0_115 = arith.constant 0 : index
    %167 = vector.load %arg19[%c0_113, %c0_114, %c0_115] : memref<1x1x32xf32, #tpu.memory_space<vmem>>, vector<1x1x32xf32>
    %168 = vector.shape_cast %167 : vector<1x1x32xf32> to vector<1x32xf32>
    %cst_116 = arith.constant dense<0.000000e+00> : vector<8xf32>
    %169 = vector.multi_reduction <add>, %164, %cst_116 [1] : vector<8x32xf32> to vector<8xf32>
    %170 = vector.shape_cast %169 : vector<8xf32> to vector<8x1xf32>
    %cst_117 = arith.constant 3.200000e+01 : f32
    %171 = vector.broadcast %cst_117 : f32 to vector<8x1xf32>
    %172 = arith.divf %170, %171 : vector<8x1xf32>
    %173 = vector.broadcast %172 : vector<8x1xf32> to vector<8x32xf32>
    %174 = arith.subf %164, %173 : vector<8x32xf32>
    %175 = arith.mulf %174, %174 : vector<8x32xf32>
    %cst_118 = arith.constant dense<0.000000e+00> : vector<8xf32>
    %176 = vector.multi_reduction <add>, %175, %cst_118 [1] : vector<8x32xf32> to vector<8xf32>
    %177 = vector.shape_cast %176 : vector<8xf32> to vector<8x1xf32>
    %cst_119 = arith.constant 3.200000e+01 : f32
    %178 = vector.broadcast %cst_119 : f32 to vector<8x1xf32>
    %179 = arith.divf %177, %178 : vector<8x1xf32>
    %180 = vector.broadcast %172 : vector<8x1xf32> to vector<8x32xf32>
    %181 = arith.subf %164, %180 : vector<8x32xf32>
    %cst_120 = arith.constant 9.99999974E-6 : f32
    %182 = vector.broadcast %cst_120 : f32 to vector<8x1xf32>
    %183 = arith.addf %179, %182 : vector<8x1xf32>
    %184 = math.rsqrt %183 : vector<8x1xf32>
    %185 = vector.broadcast %184 : vector<8x1xf32> to vector<8x32xf32>
    %186 = arith.mulf %181, %185 : vector<8x32xf32>
    %187 = vector.broadcast %166 : vector<1x32xf32> to vector<8x32xf32>
    %188 = arith.mulf %186, %187 : vector<8x32xf32>
    %189 = vector.broadcast %168 : vector<1x32xf32> to vector<8x32xf32>
    %190 = arith.addf %188, %189 : vector<8x32xf32>
    %191 = vector.shape_cast %190 : vector<8x32xf32> to vector<1x8x32xf32>
    %c0_121 = arith.constant 0 : index
    %c0_122 = arith.constant 0 : index
    %c0_123 = arith.constant 0 : index
    %192 = vector.load %arg20[%c0_121, %c0_122, %c0_123] : memref<1x8x32xf32, #tpu.memory_space<vmem>>, vector<1x8x32xf32>
    tpu.vector_store %arg20[%c0_121, %c0_122, %c0_123], %191 {strides = array<i32>} : memref<1x8x32xf32, #tpu.memory_space<vmem>>, vector<1x8x32xf32>,
    return
  }
  func.func @transform_0(%arg0: i32, %arg1: i32) -> (i32, i32, i32) {
    %c0_i32 = arith.constant 0 : i32
    %c0_i32_0 = arith.constant 0 : i32
    %c0_i32_1 = arith.constant 0 : i32
    return %arg0, %c0_i32, %c0_i32_0 : i32, i32, i32
  }
  func.func @transform_1(%arg0: i32, %arg1: i32) -> (i32, i32, i32) {
    %c0_i32 = arith.constant 0 : i32
    %c0_i32_0 = arith.constant 0 : i32
    %c0_i32_1 = arith.constant 0 : i32
    return %arg0, %c0_i32, %c0_i32_0 : i32, i32, i32
  }
  func.func @transform_2(%arg0: i32, %arg1: i32) -> (i32, i32, i32, i32) {
    %c0_i32 = arith.constant 0 : i32
    %c0_i32_0 = arith.constant 0 : i32
    %c0_i32_1 = arith.constant 0 : i32
    %c0_i32_2 = arith.constant 0 : i32
    return %arg1, %c0_i32, %c0_i32_0, %c0_i32_1 : i32, i32, i32, i32
  }
  func.func @transform_3(%arg0: i32, %arg1: i32) -> (i32, i32, i32, i32) {
    %c0_i32 = arith.constant 0 : i32
    %c0_i32_0 = arith.constant 0 : i32
    %c0_i32_1 = arith.constant 0 : i32
    %c0_i32_2 = arith.constant 0 : i32
    return %arg1, %c0_i32, %c0_i32_0, %c0_i32_1 : i32, i32, i32, i32
  }
  func.func @transform_4(%arg0: i32, %arg1: i32) -> (i32, i32, i32, i32) {
    %c0_i32 = arith.constant 0 : i32
    %c0_i32_0 = arith.constant 0 : i32
    %c0_i32_1 = arith.constant 0 : i32
    %c0_i32_2 = arith.constant 0 : i32
    return %arg1, %c0_i32, %c0_i32_0, %c0_i32_1 : i32, i32, i32, i32
  }
  func.func @transform_5(%arg0: i32, %arg1: i32) -> (i32, i32, i32, i32) {
    %c0_i32 = arith.constant 0 : i32
    %c0_i32_0 = arith.constant 0 : i32
    %c0_i32_1 = arith.constant 0 : i32
    %c0_i32_2 = arith.constant 0 : i32
    return %arg1, %c0_i32, %c0_i32_0, %c0_i32_1 : i32, i32, i32, i32
  }
  func.func @transform_6(%arg0: i32, %arg1: i32) -> (i32, i32, i32, i32) {
    %c0_i32 = arith.constant 0 : i32
    %c0_i32_0 = arith.constant 0 : i32
    %c0_i32_1 = arith.constant 0 : i32
    %c0_i32_2 = arith.constant 0 : i32
    return %arg1, %c0_i32, %c0_i32_0, %c0_i32_1 : i32, i32, i32, i32
  }
  func.func @transform_7(%arg0: i32, %arg1: i32) -> (i32, i32, i32, i32) {
    %c0_i32 = arith.constant 0 : i32
    %c0_i32_0 = arith.constant 0 : i32
    %c0_i32_1 = arith.constant 0 : i32
    %c0_i32_2 = arith.constant 0 : i32
    return %arg1, %c0_i32, %c0_i32_0, %c0_i32_1 : i32, i32, i32, i32
  }
  func.func @transform_8(%arg0: i32, %arg1: i32) -> (i32, i32, i32, i32) {
    %c0_i32 = arith.constant 0 : i32
    %c0_i32_0 = arith.constant 0 : i32
    %c0_i32_1 = arith.constant 0 : i32
    %c0_i32_2 = arith.constant 0 : i32
    return %arg1, %c0_i32, %c0_i32_0, %c0_i32_1 : i32, i32, i32, i32
  }
  func.func @transform_9(%arg0: i32, %arg1: i32) -> (i32, i32, i32) {
    %c0_i32 = arith.constant 0 : i32
    %c0_i32_0 = arith.constant 0 : i32
    %c0_i32_1 = arith.constant 0 : i32
    return %arg1, %c0_i32, %c0_i32_0 : i32, i32, i32
  }
  func.func @transform_10(%arg0: i32, %arg1: i32) -> (i32, i32, i32) {
    %c0_i32 = arith.constant 0 : i32
    %c0_i32_0 = arith.constant 0 : i32
    %c0_i32_1 = arith.constant 0 : i32
    return %arg1, %c0_i32, %c0_i32_0 : i32, i32, i32
  }
  func.func @transform_11(%arg0: i32, %arg1: i32) -> (i32, i32, i32) {
    %c0_i32 = arith.constant 0 : i32
    %c0_i32_0 = arith.constant 0 : i32
    %c0_i32_1 = arith.constant 0 : i32
    return %arg1, %c0_i32, %c0_i32_0 : i32, i32, i32
  }
  func.func @transform_12(%arg0: i32, %arg1: i32) -> (i32, i32, i32) {
    %c0_i32 = arith.constant 0 : i32
    %c0_i32_0 = arith.constant 0 : i32
    %c0_i32_1 = arith.constant 0 : i32
    return %arg1, %c0_i32, %c0_i32_0 : i32, i32, i32
  }
  func.func @transform_13(%arg0: i32, %arg1: i32) -> (i32, i32, i32) {
    %c0_i32 = arith.constant 0 : i32
    %c0_i32_0 = arith.constant 0 : i32
    %c0_i32_1 = arith.constant 0 : i32
    return %arg1, %c0_i32, %c0_i32_0 : i32, i32, i32
  }
  func.func @transform_14(%arg0: i32, %arg1: i32) -> (i32, i32, i32) {
    %c0_i32 = arith.constant 0 : i32
    %c0_i32_0 = arith.constant 0 : i32
    %c0_i32_1 = arith.constant 0 : i32
    return %arg1, %c0_i32, %c0_i32_0 : i32, i32, i32
  }
  func.func @transform_15(%arg0: i32, %arg1: i32) -> (i32, i32, i32) {
    %c0_i32 = arith.constant 0 : i32
    %c0_i32_0 = arith.constant 0 : i32
    %c0_i32_1 = arith.constant 0 : i32
    return %arg1, %c0_i32, %c0_i32_0 : i32, i32, i32
  }
  func.func @transform_16(%arg0: i32, %arg1: i32) -> (i32, i32, i32) {
    %c0_i32 = arith.constant 0 : i32
    %c0_i32_0 = arith.constant 0 : i32
    %c0_i32_1 = arith.constant 0 : i32
    return %arg1, %c0_i32, %c0_i32_0 : i32, i32, i32
  }
  func.func @transform_17(%arg0: i32, %arg1: i32) -> (i32, i32, i32) {
    %c0_i32 = arith.constant 0 : i32
    %c0_i32_0 = arith.constant 0 : i32
    %c0_i32_1 = arith.constant 0 : i32
    return %arg1, %c0_i32, %c0_i32_0 : i32, i32, i32
  }
  func.func @transform_18(%arg0: i32, %arg1: i32) -> (i32, i32, i32) {
    %c0_i32 = arith.constant 0 : i32
    %c0_i32_0 = arith.constant 0 : i32
    %c0_i32_1 = arith.constant 0 : i32
    return %arg0, %c0_i32, %c0_i32_0 : i32, i32, i32
  }
}

</mosaic_0001>

<bundles_post_ra>
// kernel: tpu_custom_call.1
= control target key start
LH: loop header
LB: loop body
LE: loop exit
PB: predicated region body
PF: predicated region fallthrough
CT: control target
= control target key end

     0   :  { %s2450_s0 = inlined_call_operand.vmem [shape: f32[2,8,32], index: 0, kind: input, shape index: {}]   ;;  %s2451_s1 = inlined_call_operand.vmem [shape: f32[2,1,8], index: 1, kind: input, shape index: {}]   ;;  %s2452_s2 = inlined_call_operand.vmem [shape: bf16[2,2,32,16], index: 2, kind: input, shape index: {}]   ;;  %s2453_s3 = inlined_call_operand.vmem [shape: bf16[2,2,32,16], index: 3, kind: input, shape index: {}]   ;;  %s2454_s4 = inlined_call_operand.vmem [shape: bf16[2,2,32,16], index: 4, kind: input, shape index: {}]   ;;  %s2455_s5 = inlined_call_operand.vmem [shape: f32[2,2,1,16], index: 5, kind: input, shape index: {}]   ;;  %s2456_s6 = inlined_call_operand.vmem [shape: f32[2,2,1,16], index: 6, kind: input, shape index: {}]   ;;  %s2457_s7 = inlined_call_operand.vmem [shape: f32[2,2,1,16], index: 7, kind: input, shape index: {}]   ;;  %s2458_s8 = inlined_call_operand.vmem [shape: bf16[2,2,16,32], index: 8, kind: input, shape index: {}]   ;;  %s2459_s9 = inlined_call_operand.vmem [shape: f32[2,1,32], index: 9, kind: input, shape index: {}]   ;;  %s2460_s10 = inlined_call_operand.vmem [shape: f32[2,1,32], index: 10, kind: input, shape index: {}]   ;;  %s2461_s11 = inlined_call_operand.vmem [shape: f32[2,1,32], index: 11, kind: input, shape index: {}]   ;;  %s2462_s12 = inlined_call_operand.vmem [shape: bf16[2,32,32], index: 12, kind: input, shape index: {}]   ;;  %s2463_s13 = inlined_call_operand.vmem [shape: f32[2,1,32], index: 13, kind: input, shape index: {}]   ;;  %s2464_s14 = inlined_call_operand.vmem [shape: bf16[2,32,32], index: 14, kind: input, shape index: {}]   ;;  %s2465_s15 = inlined_call_operand.vmem [shape: f32[2,1,32], index: 15, kind: input, shape index: {}]   ;;  %s2466_s16 = inlined_call_operand.vmem [shape: f32[2,1,32], index: 16, kind: input, shape index: {}]   ;;  %s2467_s17 = inlined_call_operand.vmem [shape: f32[2,1,32], index: 17, kind: input, shape index: {}]   ;;  %s2468_s18 = inlined_call_operand.hbm [shape: f32[2,8,32], index: 18, kind: output, shape index: {}]  }
   0x1   :  { %2487 = sst [smem:[#allocation21_spill]] %s2450_s0 }
   0x2   :  { %2488 = sst [smem:[#allocation22_spill]] %s2451_s1 }
   0x3   :  { %2489 = sst [smem:[#allocation23_spill]] %s2452_s2 }
   0x4   :  { %2490 = sst [smem:[#allocation24_spill]] %s2453_s3 }
   0x5   :  { %2491 = sst [smem:[#allocation25_spill]] %s2454_s4 }
   0x6   :  { %2492 = sst [smem:[#allocation26_spill]] %s2455_s5 }
   0x7   :  { %2493 = sst [smem:[#allocation27_spill]] %s2456_s6 }
   0x8   :  { %2494 = sst [smem:[#allocation28_spill]] %s2457_s7 }
   0x9   :  { %2495 = sst [smem:[#allocation29_spill]] %s2458_s8 }
   0xa   :  { %2496 = sst [smem:[#allocation30_spill]] %s2459_s9 }
   0xb   :  { %2497 = sst [smem:[#allocation31_spill]] %s2460_s10 }
   0xc   :  { %2498 = sst [smem:[#allocation32_spill]] %s2461_s11 }
   0xd   :  { %2499 = sst [smem:[#allocation33_spill]] %s2462_s12 }
   0xe   :  { %2500 = sst [smem:[#allocation34_spill]] %s2464_s14 }
   0xf   :  { %2501 = sst [smem:[#allocation35_spill]] %s2465_s15 }
  0x10   :  { %2502 = sst [smem:[#allocation36_spill]] %s2466_s16 }
  0x11   :  { %2503 = sst [smem:[#allocation37_spill]] %s2467_s17 }
  0x12   :  { %2504 = sst [smem:[#allocation38_spill]] %s2468_s18 }
  0x13   :  { %23 = vsyncpa [#allocation3], 0 }
  0x14   :  { %25 = vsyncpa [#allocation3 + $0x1], 0  ;;  %s2127_s27 = smov 0   ;;  %s2129_s28 = smov 0  }
  0x15   :  { %s2131_s29 = smov 0   ;;  %s2133_s30 = smov 0  }
  0x16   :  { %s2135_s0 = smov 0   ;;  %s2137_s19 = smov 0  }
  0x17   :  { %s2139_s1 = smov 0   ;;  %s2141_s20 = smov 0  }
  0x18 LB: > { %2505 = sst [smem:[#allocation5_spill]] %s2000_s27  ;;  %s1679_s21 = sadd.s32 4294967295, %s2028_s20   ;;  %s2028_s20 = sphi %s2141_s20, %s31_s20   ;;  %s2024_s1 = sphi %s2139_s1, %s2569_s1   ;;  %s2020_s19 = sphi %s2137_s19, %s2568_s19   ;;  %s2016_s0 = sphi %s2135_s0, %s2567_s0   ;;  %s2012_s30 = sphi %s2133_s30, %s2566_s30   ;;  %s2008_s29 = sphi %s2131_s29, %s2565_s29   ;;  %s2004_s28 = sphi %s2129_s28, %s2564_s28   ;;  %s2000_s27 = sphi %s2127_s27, %s2563_s27  }
  0x19   : > { %2506 = sst [smem:[#allocation6_spill]] %s2004_s28  ;;  %s1680_s22 = sadd.s32 4294967294, %s2028_s20  }
  0x1a   : > { %2507 = sst [smem:[#allocation7_spill]] %s2008_s29  ;;  %s40_s2 = sadd.s32 1, %s2020_s19 }
  0x1b   : > { %2508 = sst [smem:[#allocation8_spill]] %s2012_s30  ;;  %p41_p0 = scmp.ge.s32.totalorder %s40_s2, 2 }
  0x1c   : > { %2509 = sst [smem:[#allocation9_spill]] %s2016_s0  ;;  %s43_s23 = sadd.s32 1, %s2024_s1 }
  0x1d   : > { %2510 = sst [smem:[#allocation10_spill]] %s2020_s19  ;;  %p528_p1 = scmp.ne.s32.totalorder %s2008_s29, %s2004_s28 }
  0x1e   : > { %2511 = sst [smem:[#allocation11_spill]] %s2024_s1  ;;  %p529_p2 = scmp.eq.s32.totalorder %s1679_s21, 3 }
  0x1f   : > { %2512 = sst [smem:[#allocation12_spill]] %s2028_s20  ;;  %s2571_s2 = smov (%p41_p0, %s40_s2), 0 }
  0x20   : > { %2513 = sst [smem:[#allocation13_spill]] %s2571_s2  ;;  %s2573_s23 = smov (!%p41_p0, %s43_s23), %s2024_s1 }
  0x21   : > { %p2176_p3 = por %p529_p2, %p528_p1  ;;  %p534_p4 = scmp.ne.s32.totalorder %s2004_s28, %s2000_s27 }
  0x22   : > { %p45_p5 = scmp.ge.s32.totalorder %s2573_s23, 2  ;;  %p535_p6 = scmp.eq.s32.totalorder %s1680_s22, 3 }
  0x23   : > { %s2514_s24 = scalar_select %p2176_p3, 1, 0 }
  0x24   : > { %p1683_p7 = scmp.ge.s32.totalorder %s2028_s20, 1  ;;  %p677_p8 = scmp.lt.s32.totalorder %s2028_s20, 5 }
  0x25   : > { %2515 = sst [smem:[#allocation14_spill]] %s2514_s24  ;;  %s2575_s23 = smov (%p45_p5, %s2573_s23), 0 }
  0x26   : > { %2516 = sst [smem:[#allocation15_spill]] %s2575_s23  ;;  %p2186_p9 = por %p535_p6, %p534_p4 }
  0x27   : > { %p678_p10 = pnand %p1683_p7, %p677_p8  ;;  %s515_s26 = ssub.s32 %s2024_s1, %s2575_s23 }
  0x28   : > { %s2517_s25 = scalar_select %p2186_p9, 1, 0 }
  0x29   : > { %s518_s21 = sadd.s32 1, %s2008_s29  ;;  %p516_p11 = scmp.eq.s32.totalorder %s515_s26, 0 }
  0x2a   : > { %2518 = sst [smem:[#allocation16_spill]] %s2517_s25  ;;  %681 = sbr.rel (%p678_p10) target bundleno = 2090 (0x82a), region = 92 }
  0x2b   : > { %s2194_s2 = scalar_select %p516_p11, %s2008_s29, %s518_s21  }
  0x2d   : > { %2519 = sst [smem:[#allocation17_spill]] %s2194_s2 }
  0x2f   : > { %s2475_s22 = sand.u32 1, %s2004_s28   ;;  %p796_p12 = scmp.lt.s32.totalorder %s2016_s0, 1 }
  0x30   : > { %s1684_s19 = sshll.u32 %s2475_s22, 3  ;;  %p803_p13 = scmp.lt.s32.totalorder %s2012_s30, 1 }
  0x31   : > { %s2202_s27 = scalar_select %p796_p12, %s2016_s0, 1 }
  0x32   : > { %s2205_s23 = scalar_select %p803_p13, %s2012_s30, 1 }
  0x33   : > { %2520 = sst [smem:[#allocation18_spill]] %s2202_s27  ;;  %s1685_s26 = sshll.u32 %s2202_s27, 3 }
  0x34   : > { %s2522_s20 = sld [smem:[#allocation21_spill]]  ;;  %s1809_s18 = sshll.u32 %s2205_s23, 5 }
  0x35   : > { %s2523_s30 = sld [smem:[#allocation23_spill]]  ;;  %s1812_s1 = sshll.u32 %s2205_s23, 4 }
  0x36   : > { %s2524_s3 = sld [smem:[#allocation24_spill]]  ;;  %s2291_s9 = scalar_lea.vmem [#allocation2], %s1684_s19 }
  0x37   : > { %s2525_s4 = sld [smem:[#allocation25_spill]] }
  0x38   : > { %s2526_s5 = sld [smem:[#allocation26_spill]] }
  0x39   : > { %s2527_s6 = sld [smem:[#allocation27_spill]] }
  0x3a   : > { %s799_s24 = scalar_lea.vmem %s2522_s20, %s1685_s26  ;;  %s1692_s20 = sshll.u32 %s2205_s23, 1 }
  0x3b   : > { %s2219_s17 = scalar_lea.vmem %s2523_s30, %s1809_s18  ;;  %s2528_s7 = sld [smem:[#allocation28_spill]] }
  0x3c   : > { %s2224_s14 = scalar_lea.vmem %s2524_s3, %s1809_s18  ;;  %s2529_s8 = sld [smem:[#allocation29_spill]] }
  0x3d   : > { %s2229_s25 = scalar_lea.vmem %s2525_s4, %s1809_s18  ;;  %s2534_s12 = sld [smem:[#allocation33_spill]] }
  0x3e   : > { %s2235_s28 = scalar_lea.vmem %s2526_s5, %s1692_s20  ;;  %s2536_s22 = sld [smem:[#allocation34_spill]] }
  0x3f   : > { %s2240_s21 = scalar_lea.vmem %s2527_s6, %s1692_s20  ;;  %s2537_s30 = sld [smem:[#allocation35_spill]] }
  0x40   : > { %s2538_s15 = sld [smem:[#allocation36_spill]] }
  0x41   : > { %s2245_s29 = scalar_lea.vmem %s2528_s7, %s1692_s20  ;;  %s2540_s2 = sld [smem:[#allocation8_spill]] }
  0x42   : > { %s2251_s3 = scalar_lea.vmem %s2529_s8, %s1812_s1  ;;  %s851_s8 = scalar_lea.vmem %s2463_s13, %s2205_s23 }
  0x43   : > { %2530 = sst [smem:[#allocation19_spill]] %s2251_s3  ;;  %s2268_s7 = scalar_lea.vmem %s2534_s12, %s1812_s1 }
  0x44   : > { %2535 = sst [smem:[#allocation20_spill]] %s2268_s7  ;;  %s2277_s26 = scalar_lea.vmem %s2536_s22, %s1812_s1 }
  0x45   : > { %s859_s10 = scalar_lea.vmem %s2537_s30, %s2205_s23  ;;  %s2539_s12 = sld [smem:[#allocation37_spill]] }
  0x46   : > { %s862_s11 = scalar_lea.vmem %s2538_s15, %s2205_s23 }
  0x47   : > { %p1701_p0 = scmp.ne.s32.totalorder %s2540_s2, 0 }
  0x49   : > { %870 = sbr.rel (%p1701_p0) target bundleno = 80 (0x50), region = 96 }
  0x4b   : > { %s865_s7 = scalar_lea.vmem %s2539_s12, %s2205_s23 }
  0x4e   : > { %v871_v0 = vld [vmem:[%s799_s24] sm:$0xff]  ;;  %vm872_vm0 = vcmask 261120  }
  0x4f   : > { %873 = vst.msk [vmem:[%s2291_s9] sm:$0xff] %vm872_vm0, %v871_v0 }
  0x50 PF: > { %v1816_v1 = vld [vmem:[%s2219_s17 + $0x8] sm:$0xff]  ;;  %v1815_v3 = vld [vmem:[%s2219_s17] sm:$0xff]  ;;  %vm907_vm1 = vcmask 261120   ;;  %vm993_vm2 = vcmask 130048   ;;  %s2541_s3 = sld [smem:[#allocation18_spill]]  ;;  %v1825_v20 = vld [vmem:[%s2224_s14 + $0x18] sm:$0xff]  ;;  %v876_v22 = vlaneseq }
  0x51   : > { %v1818_v2 = vld [vmem:[%s2224_s14 + $0x8] sm:$0xff]  ;;  %v1817_v4 = vld [vmem:[%s2224_s14] sm:$0xff]  ;;  %917 = vmatpush.bf16.msra.mxu0 %v1816_v1  ;;  %v1824_v21 = vld [vmem:[%s2224_s14 + $0x10] sm:$0xff]  ;;  %s2542_s24 = sld [smem:[#allocation22_spill]]  ;;  %v2030_v26 = vmov 0.0   ;;  %vm1015_vm4 = vcmask 64512  }
  0x52   : > { %950 = vmatpush.bf16.msra.mxu1 %v1818_v2  ;;  %v1907_v7 = vld [vmem:[%s2240_s21] ss:$0 sm:$0xff]  ;;  %v1820_v18 = vld [vmem:[%s2229_s25 + $0x8] sm:$0xff]  ;;  %v877_v23 = vshrl.u32 %v876_v22, 7  ;;  %v879_v24 = vand.u32 127, %v876_v22  ;;  %v1823_v34 = vld [vmem:[%s2219_s17 + $0x18] sm:$0xff] }
  0x53   : > { %v1906_v10 = vld [vmem:[%s2235_s28] ss:$0 sm:$0xff]  ;;  %983 = vmatpush.bf16.msra.mxu2 %v1820_v18  ;;  %v1822_v35 = vld [vmem:[%s2219_s17 + $0x10] sm:$0xff]  ;;  %vm1031_vm5 = vcmask 1043456   ;;  %v1910_v45 = vld [vmem:[%s2240_s21 + $0x1] ss:$0 sm:$0xff] }
  0x54   : > { %v1819_v19 = vld [vmem:[%s2229_s25] sm:$0xff]  ;;  %vm880_vm3 = vcmp.gt.s32.totalorder %v879_v24, %v877_v23  ;;  %s2544_s14 = sld [smem:[#allocation19_spill]]  ;;  %v1827_v55 = vld [vmem:[%s2229_s25 + $0x18] sm:$0xff]  ;;  %v1826_v56 = vld [vmem:[%s2229_s25 + $0x10] sm:$0xff]  ;;  %s1426_s15 = sshll.u32 %s2291_s9, 4  ;;  %s1427_s15 = int_to_ptr.vmem [resolvable:$true] %s1426_s15 }
  0x55   : > { %918 = vmatpush.bf16.msra.mxu0 %v1815_v3  ;;  %v881_v27 = vsel %vm880_vm3, -1e+30, %v2030_v26  ;;  %v1909_v36 = vld [vmem:[%s2245_s29] ss:$0 sm:$0xff]  ;;  %v1911_v61 = vld [vmem:[%s2235_s28 + $0x1] ss:$0 sm:$0xff] }
  0x56   : > { %v2300_v5 = vld [vmem:[%s2291_s9] sm:$0xff]  ;;  %951 = vmatpush.bf16.msra.mxu1 %v1817_v4  ;;  %s2545_s25 = sld [smem:[#allocation30_spill]] }
  0x57   : > { %v2304_v6 = vpack.c.bf16 %v2300_v5, %v2300_v5  ;;  %984 = vmatpush.bf16.msra.mxu2 %v1819_v19  ;;  %s2543_s1 = scalar_lea.vmem %s2542_s24, %s2541_s3  ;;  %v1912_v1 = vld [vmem:[%s2245_s29 + $0x1] ss:$0 sm:$0xff]  ;;  %s2547_s21 = sld [smem:[#allocation20_spill]] }
  0x58   : > { %v1908_v25 = vld [vmem:[%s2543_s1] ss:$0 sm:$0xff]  ;;  %s2548_s18 = sld [smem:[#allocation31_spill]] }
  0x59   : > { %1710 = vmatmul.msk.bf16.vlgmr.msra.gmra.mxu0 %vm907_vm1, %v2304_v6  ;;  %1719 = vmatmul.msk.bf16.vlgmr.msra.gmra.mxu1 %vm907_vm1, %v2304_v6  ;;  %v2325_v28 = vadd.f32 %v1908_v25, %v881_v27  ;;  %s2550_s5 = sld [smem:[#allocation32_spill]] }
  0x5a   : > { %1728 = vmatmul.msk.bf16.vlgmr.msra.gmra.mxu2 %vm907_vm1, %v2304_v6  ;;  %1079 = vmatpush.bf16.msrb.mxu1 %v1823_v34  ;;  %v1821_v0 = vld [vmem:[%s2544_s14] sm:$0xff]  ;;  %v1828_v23 = vld [vmem:[%s2544_s14 + $0x8] sm:$0xff]  ;;  %s2554_s3 = sld [smem:[#allocation6_spill]] }
  0x5b   : > { %1114 = vmatpush.bf16.msrb.mxu2 %v1825_v20  ;;  %s2556_s17 = sld [smem:[#allocation38_spill]] }
  0x5c   : > { %s2546_s28 = scalar_lea.vmem %s2545_s25, %s2205_s23 }
  0x5e   : > { %1080 = vmatpush.bf16.msrb.mxu1 %v1822_v35  ;;  %s2549_s4 = scalar_lea.vmem %s2548_s18, %s2205_s23 }
  0x5f   : > { %1115 = vmatpush.bf16.msrb.mxu2 %v1824_v21  ;;  %s2551_s27 = scalar_lea.vmem %s2550_s5, %s2205_s23 }
  0x63   : > { %1231 = vmatpush.bf16.msra.mxu2 %v1828_v23 }
  0x69   : > { %1744 = vmatmul.msk.bf16.vlgmr.msrb.gmra.mxu1 %vm907_vm1, %v2304_v6 }
  0x6a   : > { %1758 = vmatmul.msk.bf16.vlgmr.msrb.gmra.mxu2 %vm907_vm1, %v2304_v6 }
  0xd6   : > { %v920_v8 = vpop.f32.mrf.mxu0  ;;  %v953_v9 = vpop.f32.mrf.mxu1 }
  0xd7   : > { %v954_v11 = vadd.f32 %v1907_v7, %v953_v9  ;;  %v921_v13 = vadd.f32 %v1906_v10, %v920_v8 }
  0xd9   : > { %v991_v12 = vpack.c.bf16 %v954_v11, %v954_v11  ;;  %v990_v17 = vpack.c.bf16 %v921_v13, %v921_v13 }
  0xdb   : > { %v998_v14 = vsel %vm993_vm2, %v991_v12, 0 }
  0xdc   : > { %1007 = vmatpush.bf16.xpose.msra.mxu3 %v998_v14 }
  0xdd   : > { %v986_v37 = vpop.f32.mrf.mxu2 }
  0xde   : > { %v922_v15 = vpop.f32.mrf.mxu0  ;;  %v955_v16 = vpop.f32.mrf.mxu1  ;;  %v987_v38 = vadd.f32 %v1909_v36, %v986_v37 }
  0xe0   : > { %v992_v39 = vpack.c.bf16 %v987_v38, %v987_v38  ;;  %v2031_v38 = vmov 32.0  }
  0xe2   : > { %v1033_v41 = vsel %vm1031_vm5, %v992_v39, 0 }
  0xe3   : > { %1729 = vmatmul.msk.bf16.vlgmr.msra.gmra.mxu3 %vm993_vm2, %v990_v17  ;;  %1042 = vmatpush.bf16.msrb.mxu0 %v1033_v41 }
  0xe4   : > { %1149 = vmatpush.bf16.msrb.mxu3 %v1827_v55 }
  0xe5   : > { %v988_v44 = vpop.f32.mrf.mxu2 }
  0xe6   : > { %v1082_v53 = vpop.f32.mrf.mxu1 }
  0xe7   : > { %v1083_v62 = vadd.f32 %v1911_v61, %v1082_v53 }
  0xe8   : > { %1150 = vmatpush.bf16.msrb.mxu3 %v1826_v56 }
  0xe9   : > { %v1156_v63 = vpack.c.bf16 %v1083_v62, %v1083_v62  ;;  %v1914_v62 = vld [vmem:[%s2549_s4] ss:$0 sm:$0xff] }
  0xec   : > { %1253 = vmatpush.bf16.msra.mxu3 %v1821_v0  ;;  %v1915_v0 = vld [vmem:[%s2551_s27] ss:$0 sm:$0xff] }
  0xed   : > { %v1117_v47 = vpop.f32.mrf.mxu2 }
  0xee   : > { %v1118_v49 = vadd.f32 %v1910_v45, %v1117_v47  ;;  %v1084_v54 = vpop.f32.mrf.mxu1 }
  0xef   : > { %v1831_v54 = vld [vmem:[%s2277_s26] sm:$0xff] }
  0xf0   : > { %v1157_v50 = vpack.c.bf16 %v1118_v49, %v1118_v49  ;;  %v1830_v49 = vld [vmem:[%s2547_s21 + $0x8] sm:$0xff] }
  0xf2   : > { %v1163_v51 = vsel %vm993_vm2, %v1157_v50, 0  ;;  %v1829_v50 = vld [vmem:[%s2547_s21] sm:$0xff] }
  0xf3   : > { %1172 = vmatpush.bf16.xpose.msra.mxu0 %v1163_v51  ;;  %1772 = vmatmul.msk.bf16.vlgmr.msrb.gmra.mxu3 %vm907_vm1, %v2304_v6  ;;  %v1832_v51 = vld [vmem:[%s2277_s26 + $0x8] sm:$0xff] }
  0xf5   : > { %v1119_v52 = vpop.f32.mrf.mxu2 }
 0x166   : > { %v1009_v29 = vpop.f32.mrf.mxu3 }
 0x167   : > { %v1013_v30 = vmul.f32 0.25, %v1009_v29 }
 0x169   : > { %v1014_v31 = vadd.f32 %v1013_v30, %v2325_v28 }
 0x16b   : > { %v1016_v32 = vsel %vm1015_vm4, %v1014_v31, -inf }
 0x16c   : > { %1017 = vmax.xlane.f32.xlu0 %v1016_v32 }
 0x16e   : > { %v1011_v33 = vpop.f32.mrf.mxu3 }
 0x176   : > { %v1152_v2 = vpop.f32.mrf.mxu3 }
 0x177   : > { %v1153_v4 = vadd.f32 %v1912_v1, %v1152_v2 }
 0x179   : > { %v1158_v8 = vpack.c.bf16 %v1153_v4, %v1153_v4 }
 0x17b   : > { %v1196_v6 = vsel %vm1031_vm5, %v1158_v8, 0 }
 0x17c   : > { %1205 = vmatpush.bf16.msra.mxu1 %v1196_v6 }
 0x17e   : > { %v1154_v9 = vpop.f32.mrf.mxu3 }
 0x180   : > { %1372 = vmatpush.bf16.msrb.mxu1 %v1832_v51 }
 0x184   : > { %1373 = vmatpush.bf16.msrb.mxu1 %v1831_v54 }
 0x1df   : > { %v1018_v40 = vpop.xlane.xlu0 %1017 }
 0x1e0   : > { %v1019_v42 = vsub.f32 %v1014_v31, %v1018_v40  ;;  %v1913_v31 = vld [vmem:[%s2546_s28] ss:$0 sm:$0xff] }
 0x1e2   : > { %v1020_v43 = vmul.f32 1.442695, %v1019_v42 }
 0x1e4   : > { %1920 = vpow2.f32 %v1020_v43 }
 0x1ea   : > { %v1921_v46 = vpop.eup %1920 }
 0x1eb   : > { %v1022_v48 = vsel %vm1015_vm4, %v1921_v46, 0.0 }
 0x1ec   : > { %1023 = vadd.xlane.f32.xlu0 %v1022_v48 }
 0x25f   : > { %v1024_v57 = vpop.xlane.xlu0 %1023 }
 0x260   : > { %1922 = vrcp.f32 %v1024_v57 }
 0x266   : > { %v1923_v58 = vpop.eup %1922 }
 0x267   : > { %v1026_v59 = vmul.f32 %v1923_v58, %v1921_v46 }
 0x269   : > { %v1027_v60 = vpack.c.bf16 %v1026_v59, %v1026_v59 }
 0x26b   : > { %1730 = vmatmul.msk.bf16.vlgmr.msrb.gmra.mxu0 %vm1015_vm4, %v1027_v60 }
 0x26c   : > { %1334 = vmatpush.bf16.msrb.mxu0 %v1830_v49 }
 0x270   : > { %1335 = vmatpush.bf16.msrb.mxu0 %v1829_v50 }
 0x27b   : > { %1773 = vmatmul.msk.bf16.vlgmr.msra.gmra.mxu0 %vm993_vm2, %v1156_v63 }
 0x2e8   : > { %v1044_v3 = vpop.f32.mrf.mxu0 }
 0x2e9   : > { %v1048_v7 = vpack.c.bf16 %v1044_v3, %v1044_v3 }
 0x2eb   : > { %1786 = vmatmul.msk.bf16.vlgmr.msra.gmra.mxu3 %vm993_vm2, %v1048_v7  ;;  %v1916_v7 = vld [vmem:[%s851_s8] ss:$0 sm:$0xff]  ;;  %s2553_s8 = sld [smem:[#allocation9_spill]] }
 0x2f0   : > { %v1046_v10 = vpop.f32.mrf.mxu0 }
 0x2f8   : > { %v1174_v11 = vpop.f32.mrf.mxu0 }
 0x2f9   : > { %v1178_v12 = vmul.f32 0.25, %v1174_v11 }
 0x2fb   : > { %v1179_v13 = vadd.f32 %v1178_v12, %v2325_v28  ;;  %v1917_v12 = vld [vmem:[%s859_s10] ss:$0 sm:$0xff]  ;;  %s1806_s10 = sshll.u32 %s2553_s8, 3 }
 0x2fc   : > { %s1424_s29 = scalar_lea.hbm %s2556_s17, %s1806_s10 }
 0x2fd   : > { %v1180_v14 = vsel %vm1015_vm4, %v1179_v13, -inf  ;;  %s1428_s18 = sshll.u32 %s1424_s29, 4  ;;  %s1429_s18 = int_to_ptr.hbm [resolvable:$true] %s1428_s18 }
 0x2fe   : > { %1181 = vmax.xlane.f32.xlu1 %v1180_v14  ;;  %s1948_s26 = sshra.s32 %s1429_s18, 4  ;;  %s1949_s26 = int_to_ptr.hbm [resolvable:$true] %s1948_s26 }
 0x2ff   : > { %s1950_s22 = scalar_lea.hbm %s1949_s26, 8  ;;  %p1955_p5 = scmp.lt.s32.totalorder %s1949_s26, %s2556_s17 }
 0x300   : > { %v1176_v15 = vpop.f32.mrf.mxu0  ;;  %p1951_p1 = scmp.ne.s32.totalorder %s1949_s26, %s1950_s22 }
 0x302   : > { %p1952_p2 = pnand %p1951_p1, %p2176_p3 }
 0x304   : > { %p1953_p4 = pneg %p1952_p2 }
 0x36e   : > { %v1255_v16 = vpop.f32.mrf.mxu3 }
 0x371   : > { %v1182_v17 = vpop.xlane.xlu1 %1181 }
 0x372   : > { %v1183_v18 = vsub.f32 %v1179_v13, %v1182_v17 }
 0x374   : > { %v1184_v19 = vmul.f32 1.442695, %v1183_v18 }
 0x376   : > { %1924 = vpow2.f32 %v1184_v19  ;;  %v1257_v20 = vpop.f32.mrf.mxu3 }
 0x37c   : > { %v1925_v21 = vpop.eup %1924 }
 0x37d   : > { %v1186_v22 = vsel %vm1015_vm4, %v1925_v21, 0.0 }
 0x37e   : > { %1187 = vadd.xlane.f32.xlu1 %v1186_v22 }
 0x3f1   : > { %v1188_v24 = vpop.xlane.xlu1 %1187 }
 0x3f2   : > { %1926 = vrcp.f32 %v1188_v24 }
 0x3f3   : > { %1928 = vrcp.f32 %v2031_v38 }
 0x3f8   : > { %v1927_v25 = vpop.eup %1926 }
 0x3f9   : > { %v1190_v26 = vmul.f32 %v1927_v25, %v1925_v21  ;;  %v1929_v39 = vpop.eup %1928 }
 0x3fa   : > { %v1271_v40 = vmul.f32 32.0, %v1929_v39  ;;  %vm1275_vm6 = vweird.f32 %v1929_v39 }
 0x3fb   : > { %v1191_v27 = vpack.c.bf16 %v1190_v26, %v1190_v26 }
 0x3fc   : > { %v1272_v41 = vsub.f32 1.0, %v1271_v40 }
 0x3fd   : > { %1774 = vmatmul.msk.bf16.vlgmr.msra.gmra.mxu1 %vm1015_vm4, %v1191_v27 }
 0x3fe   : > { %v1273_v42 = vmul.f32 %v1929_v39, %v1272_v41 }
 0x400   : > { %v1274_v43 = vadd.f32 %v1929_v39, %v1273_v42 }
 0x402   : > { %v1276_v44 = vsel %vm1275_vm6, %v1929_v39, %v1274_v43 }
 0x47a   : > { %v1207_v28 = vpop.f32.mrf.mxu1 }
 0x47b   : > { %v1211_v29 = vpack.c.bf16 %v1207_v28, %v1207_v28 }
 0x47d   : > { %1781 = vmatmul.msk.bf16.vlgmr.msra.gmra.mxu2 %vm993_vm2, %v1211_v29 }
 0x482   : > { %v1209_v30 = vpop.f32.mrf.mxu1 }
 0x500   : > { %v1233_v32 = vpop.f32.mrf.mxu2 }
 0x501   : > { %v1256_v33 = vadd.f32 %v1255_v16, %v1233_v32  ;;  %v1918_v32 = vld [vmem:[%s862_s11] ss:$0 sm:$0xff]  ;;  %s2559_s11 = sand.u32 1, %s2554_s3  }
 0x502   : > { %s1414_s4 = scalar_lea.sflag [#allocation3], %s2559_s11 }
 0x503   : > { %v1263_v34 = vadd.f32 %v1913_v31, %v1256_v33 }
 0x505   : > { %v1264_v35 = vadd.f32 %v1263_v34, %v2300_v5 }
 0x507   : > { %v1267_v36 = vsel %vm907_vm1, %v1264_v35, 0.0 }
 0x508   : > { %1268 = vadd.xlane.f32.xlu2 %v1267_v36  ;;  %v1235_v37 = vpop.f32.mrf.mxu2 }
 0x57b   : > { %v1269_v45 = vpop.xlane.xlu2 %1268 }
 0x57c   : > { %v1277_v46 = vmul.f32 %v1276_v44, %v1269_v45 }
 0x57e   : > { %v1278_v5 = vsub.f32 %v1264_v35, %v1277_v46  ;;  %v1919_v35 = vld [vmem:[%s865_s7] ss:$0 sm:$0xff]  ;;  %s1954_s7 = scalar_lea.hbm %s2556_s17, 16 }
 0x57f   : > { %p1956_p6 = scmp.lt.s32.totalorder %s1954_s7, %s1950_s22 }
 0x580   : > { %v1279_v47 = vmul.f32 %v1278_v5, %v1278_v5 }
 0x581   : > { %p1957_p7 = por %p1956_p6, %p1955_p5 }
 0x582   : > { %v1280_v48 = vsel %vm907_vm1, %v1279_v47, 0.0 }
 0x583   : > { %1281 = vadd.xlane.f32.xlu2 %v1280_v48  ;;  %p1958_p8 = pnand %p1957_p7, %p1953_p4 }
 0x5f6   : > { %v1282_v52 = vpop.xlane.xlu2 %1281 }
 0x5f7   : > { %v1283_v53 = vmul.f32 %v1282_v52, %v1276_v44 }
 0x5f9   : > { %v1284_v55 = vadd.f32 1e-05, %v1283_v53 }
 0x5fb   : > { %1930 = vrsqrt.f32 %v1284_v55  ;;  %vm1291_vm8 = vweird.f32 %v1284_v55 }
 0x601   : > { %v1931_v56 = vpop.eup %1930 }
 0x602   : > { %v1286_v57 = vmul.f32 %v1931_v56, %v1284_v55  ;;  %vm1292_vm7 = vweird.f32 %v1931_v56 }
 0x603   : > { %vm1293_vm9 = vmor %vm1291_vm8, %vm1292_vm7 }
 0x604   : > { %v1287_v58 = vmul.f32 %v1931_v56, %v1286_v57 }
 0x606   : > { %v1288_v59 = vmul.f32 0.5, %v1287_v58 }
 0x608   : > { %v1289_v60 = vsub.f32 1.5, %v1288_v59 }
 0x60a   : > { %v1290_v61 = vmul.f32 %v1931_v56, %v1289_v60 }
 0x60c   : > { %v1294_v63 = vsel %vm1293_vm9, %v1931_v56, %v1290_v61 }
 0x60d   : > { %v1295_v1 = vmul.f32 %v1294_v63, %v1278_v5 }
 0x60f   : > { %v1299_v2 = vmul.f32 %v1914_v62, %v1295_v1 }
 0x611   : > { %v1303_v3 = vadd.f32 %v1915_v0, %v1299_v2 }
 0x613   : > { %v1304_v4 = vpack.c.bf16 %v1303_v3, %v1303_v3 }
 0x615   : > { %1795 = vmatmul.msk.bf16.vlgmr.msrb.gmra.mxu0 %vm907_vm1, %v1304_v4 }
 0x692   : > { %v1337_v8 = vpop.f32.mrf.mxu0 }
 0x693   : > { %v1338_v6 = vadd.f32 %v1916_v7, %v1337_v8 }
 0x695   : > { %v1341_v9 = vmax.f32 %v1338_v6, 0.0 }
 0x697   : > { %v1342_v10 = vpack.c.bf16 %v1341_v9, %v1341_v9 }
 0x699   : > { %1804 = vmatmul.msk.bf16.vlgmr.msrb.gmra.mxu1 %vm907_vm1, %v1342_v10 }
 0x69a   : > { %v1339_v11 = vpop.f32.mrf.mxu0 }
 0x716   : > { %v1375_v13 = vpop.f32.mrf.mxu1 }
 0x717   : > { %v1376_v14 = vadd.f32 %v1917_v12, %v1375_v13 }
 0x719   : > { %v1379_v15 = vadd.f32 %v1376_v14, %v1303_v3 }
 0x71b   : > { %v1382_v16 = vsel %vm907_vm1, %v1379_v15, 0.0 }
 0x71c   : > { %1383 = vadd.xlane.f32.xlu0 %v1382_v16 }
 0x71e   : > { %v1377_v17 = vpop.f32.mrf.mxu1 }
 0x78f   : > { %v1384_v18 = vpop.xlane.xlu0 %1383 }
 0x790   : > { %v1385_v19 = vmul.f32 %v1384_v18, %v1276_v44 }
 0x792   : > { %v1386_v20 = vsub.f32 %v1379_v15, %v1385_v19 }
 0x794   : > { %v1387_v21 = vmul.f32 %v1386_v20, %v1386_v20 }
 0x796   : > { %v1388_v22 = vsel %vm907_vm1, %v1387_v21, 0.0 }
 0x797   : > { %1389 = vadd.xlane.f32.xlu1 %v1388_v22 }
 0x80a   : > { %v1390_v23 = vpop.xlane.xlu1 %1389 }
 0x80b   : > { %v1391_v24 = vmul.f32 %v1390_v23, %v1276_v44 }
 0x80d   : > { %v1392_v25 = vadd.f32 1e-05, %v1391_v24 }
 0x80f   : > { %1932 = vrsqrt.f32 %v1392_v25  ;;  %vm1399_vm11 = vweird.f32 %v1392_v25 }
 0x815   : > { %v1933_v26 = vpop.eup %1932 }
 0x816   : > { %v1394_v27 = vmul.f32 %v1933_v26, %v1392_v25  ;;  %vm1400_vm10 = vweird.f32 %v1933_v26 }
 0x817   : > { %vm1401_vm12 = vmor %vm1399_vm11, %vm1400_vm10 }
 0x818   : > { %v1395_v28 = vmul.f32 %v1933_v26, %v1394_v27 }
 0x81a   : > { %v1396_v29 = vmul.f32 0.5, %v1395_v28 }
 0x81c   : > { %v1397_v30 = vsub.f32 1.5, %v1396_v29 }
 0x81e   : > { %v1398_v31 = vmul.f32 %v1933_v26, %v1397_v30 }
 0x820   : > { %v1402_v33 = vsel %vm1401_vm12, %v1933_v26, %v1398_v31 }
 0x821   : > { %v1403_v34 = vmul.f32 %v1402_v33, %v1386_v20 }
 0x823   : > { %v1407_v36 = vmul.f32 %v1918_v32, %v1403_v34 }
 0x825   : > { %v1411_v37 = vadd.f32 %v1919_v35, %v1407_v36 }
 0x827   : > { %1412 = vst.msk [vmem:[%s2291_s9] sm:$0xff] %vm907_vm1, %v1411_v37 }
 0x828   : > { %1961 = shalt.err (!%p1958_p8)
}
 0x829   : > { %1833 = dma.vmem_to_hbm [thread:$0]  (%p2176_p3), %s1427_s15, 128, %s1429_s18, %s1414_s4  }
 0x82a PF: > { %s2560_s9 = sld [smem:[#allocation12_spill]] }
 0x82b   : > { %s2561_s0 = sld [smem:[#allocation5_spill]] }
 0x830   : > { %p1839_p10 = scmp.ge.s32.totalorder %s2560_s9, 2 }
 0x831   : > { %s1440_s16 = sand.u32 1, %s2561_s0  }
 0x832   : > { %p1836_p11 = pnand %p1839_p10, %p2186_p9  ;;  %s1441_s2 = scalar_lea.sflag [#allocation3], %s1440_s16 }
 0x834   : > { %p1837_p12 = pneg %p1836_p11 }
 0x836   : > { %1995 = dma.done.wait (%p1837_p12), %s1441_s2, 128  }
 0x837   : > { %1997 = vsyncadd (%p1837_p12), %s1441_s2, 4294967168  ;;  %s31_s20 = sadd.s32 1, %s2560_s9   ;;  %s2563_s27 = sld [smem:[#allocation6_spill]] }
 0x838   : > { %p28_p13 = scmp.ge.s32.totalorder %s31_s20, 6   ;;  %s2564_s28 = sld [smem:[#allocation7_spill]] }
 0x839   : > { %s2565_s29 = sld [smem:[#allocation17_spill]] }
 0x83a   : > { %s2566_s30 = sld [smem:[#allocation10_spill]]  ;;  %30 = sbr.rel (!%p28_p13) target bundleno = 24 (0x18), region = 189 }
 0x83b   : > { %s2567_s0 = sld [smem:[#allocation11_spill]] }
 0x83c   : > { %s2568_s19 = sld [smem:[#allocation13_spill]] }
 0x83d   : > { %s2569_s1 = sld [smem:[#allocation15_spill]] }
 0x83f   :  { %1447 = vsyncpa [#allocation3], 1 }
 0x840   :  { %1449 = vsyncpa [#allocation3 + $0x1], 1 }

</bundles_post_ra>
